<compile_context>
chip_gen: v7x
topology: tpu7x:2x2x1
jax: 0.10.0
libtpu: 0.0.40
codegen_flags: <defaults>
</compile_context>

<pallas_src>
import jax
import jax.numpy as jnp
from jax.experimental import pallas as pl
from jax.experimental.pallas import tpu as pltpu


def _transition_kernel(x_ref, scale_ref, shift_ref, w_ref, b_ref, o_ref):
    """One (batch, H-tile) grid step.

    x_ref     : (1, TH, W/2, 2*C_in)  bf16  activations, W-pairs packed on lanes
    scale_ref : (1, 2*C_in)           f32   folded BN scale (duplicated per half)
    shift_ref : (1, 2*C_in)           f32   folded BN shift (duplicated)
    w_ref     : (2*C_in, C_out)       bf16  1x1 conv weight, rows duplicated, *0.25
    b_ref     : (1, C_out)            f32   conv bias
    o_ref     : (1, TH/2, W/2, C_out)       pooled output tile
    """
    x = x_ref[0].astype(jnp.float32)        # upcast: BN/ReLU/pool in f32 (v5e VPU)
    th, w2, c2 = x.shape
    c_out = w_ref.shape[1]

    # Folded BatchNorm (inference) + ReLU -- single fused VPU pass.
    y = jnp.maximum(x * scale_ref[0] + shift_ref[0], 0.0)

    # H-pair pooling sum: split the leading (major) axis and reduce.  The last
    # two dims (W/2, 2*C_in) are untouched -> no relayout, pure VPU adds.
    yh = jnp.sum(y.reshape(th // 2, 2, w2, c2), axis=1)          # (TH/2, W/2, 2C)

    # W-pair pooling sum + 1x1 conv + 0.25 normalization in ONE MXU matmul:
    # the lane contraction over 2*C_in with duplicated, pre-scaled weight rows
    # sums the (even-w, odd-w) channel pair while applying the conv.
    z = jnp.dot(yh.reshape((th // 2) * w2, c2).astype(jnp.bfloat16),
                w_ref[...],
                preferred_element_type=jnp.float32)              # (TH/2*W/2, C_out)
    z = z + b_ref[0]                                             # bias on pooled tensor

    # NOTE: for realistic DenseNet channel counts (C_out >= 128) this store is
    # lane-dense; at the tiny self-test C_out=2 it is masked but correct.
    o_ref[0] = z.reshape(th // 2, w2, c_out).astype(o_ref.dtype)


def _vmem_capacity_bytes():
    """Trace-time VMEM capacity query; conservative fallback if unavailable."""
    try:
        info = pltpu.get_tpu_info()
        cap = getattr(info, "vmem_capacity_bytes", None)
        if cap:
            return int(cap)
    except Exception:
        pass
    return 64 << 20  # assume v7x-like (64 MiB per TensorCore)


def _pick_tile_h(H, row_bytes, budget_bytes, min_h_blocks):
    """Largest even divisor of H whose bf16 input tile fits `budget_bytes`
    while keeping at least `min_h_blocks` grid steps along H (double-buffered
    pipelining everywhere + megacore sharding on v7x at small N).

    Falls back to 2 rows if even that exceeds the budget; the caller then
    raises vmem_limit_bytes from the measured working set.
    """
    # TODO(synk): also tile W when a single 2-row slab (W/2 * 2*C_in) exceeds
    # the VMEM budget (very large W * C_in inputs).
    max_tile = max(2, H // max(min_h_blocks, 1))
    best = 2
    for t in range(2, H + 1, 2):
        if H % t == 0 and t <= max_tile and t * row_bytes <= budget_bytes:
            best = max(best, t)
    return best


def transition_forward_nhwc(x_nhwc, gamma, beta, running_mean, running_var,
                            conv_w, conv_b, eps=1e-5, out_dtype=jnp.float32):
    """x_nhwc: (N, H, W, C_in), any float dtype (bf16 preferred upstream).
    Returns (N, H//2, W//2, C_out) in `out_dtype` (pass bf16 if the next dense
    block consumes bf16 -- halves the output HBM write)."""
    N, H, W, C_in = x_nhwc.shape
    C_out = conv_w.shape[0]
    assert H % 2 == 0 and W % 2 == 0

    # ---- parameter folding (plain JAX glue, tiny tensors) -------------------
    scale = (gamma / jnp.sqrt(running_var + eps)).astype(jnp.float32)   # (C_in,)
    shift = (beta - running_mean * scale).astype(jnp.float32)           # (C_in,)
    # Duplicate along channels to match the (W/2, 2*C_in) lane packing below.
    scale2 = jnp.concatenate([scale, scale]).reshape(1, 2 * C_in)
    shift2 = jnp.concatenate([shift, shift]).reshape(1, 2 * C_in)

    # 1x1 conv weight (C_out, C_in, 1, 1) -> (C_in, C_out); duplicate rows so
    # the lane contraction also performs the W-pair pooling sum, and fold the
    # 0.25 average-pool normalization (power of two -> exact in bf16).
    w = jnp.transpose(conv_w[:, :, 0, 0], (1, 0))                       # (C_in, C_out)
    w2 = (jnp.concatenate([w, w], axis=0) * 0.25).astype(jnp.bfloat16)  # (2C_in, C_out)
    b = conv_b.reshape(1, C_out).astype(jnp.float32)

    # ---- activation packing --------------------------------------------------
    # bf16 DMA (no-op if the caller already supplies bf16) + free row-major
    # reshape: (N, H, W, C) -> (N, H, W/2, 2C).  Even-w channels land in lanes
    # [0:C], odd-w channels in lanes [C:2C].
    W2d, C2 = W // 2, 2 * C_in
    xr = x_nhwc.astype(jnp.bfloat16).reshape(N, H, W2d, C2)

    # ---- per-generation tiling & VMEM plan ----------------------------------
    cap = _vmem_capacity_bytes()
    if cap >= (96 << 20):                 # v5e / v6e: 128 MiB physical VMEM
        tile_budget, base_limit = 8 << 20, 64 << 20
    else:                                 # v7x: 64 MiB per TensorCore
        tile_budget, base_limit = 4 << 20, 32 << 20

    min_h_blocks = max(2, -(-8 // max(N, 1)))          # >=2; >=8 total programs
    row_bytes = W2d * C2 * 2                            # one bf16 row slab
    tile_h = _pick_tile_h(H, row_bytes, tile_budget, min_h_blocks)

    # Working-set estimate: double-buffered in/out tiles + f32 intermediates
    # (y, yh) + params + margin; used to raise the limit for the fallback case.
    out_itemsize = jnp.dtype(out_dtype).itemsize
    tile_in_bytes = tile_h * row_bytes
    tile_out_bytes = (tile_h // 2) * W2d * C_out * out_itemsize
    param_bytes = 2 * C2 * 4 + C2 * C_out * 2 + C_out * 4
    est = (2 * tile_in_bytes + 2 * tile_out_bytes
           + 3 * tile_h * W2d * C2 * 4 + 2 * param_bytes + (2 << 20))
    vmem_limit = max(base_limit, est)
    vmem_limit = min(vmem_limit, max(base_limit, cap - (8 << 20)))

    grid = (N, H // tile_h)

    out = pl.pallas_call(
        _transition_kernel,
        out_shape=jax.ShapeDtypeStruct((N, H // 2, W2d, C_out), out_dtype),
        grid_spec=pltpu.PrefetchScalarGridSpec(
            num_scalar_prefetch=0,
            grid=grid,
            in_specs=[
                pl.BlockSpec((1, tile_h, W2d, C2), lambda n, h: (n, h, 0, 0)),
                pl.BlockSpec((1, C2), lambda n, h: (0, 0)),
                pl.BlockSpec((1, C2), lambda n, h: (0, 0)),
                pl.BlockSpec((C2, C_out), lambda n, h: (0, 0)),
                pl.BlockSpec((1, C_out), lambda n, h: (0, 0)),
            ],
            out_specs=pl.BlockSpec((1, tile_h // 2, W2d, C_out),
                                   lambda n, h: (n, h, 0, 0)),
        ),
        compiler_params=pltpu.CompilerParams(
            # Both axes independent -> megacore sharding on v7x even at N == 1.
            dimension_semantics=("parallel", "parallel"),
            vmem_limit_bytes=int(vmem_limit),
        ),
    )(xr, scale2, shift2, w2, b)
    return out  # (N, H/2, W/2, C_out) NHWC


def transition_forward(x_nchw, gamma, beta, running_mean, running_var,
                       conv_w, conv_b, eps=1e-5):
    """PyTorch-layout wrapper. x_nchw: (N, C_in, H, W) -> (N, C_out, H//2, W//2).

    The NCHW<->NHWC transposes are full extra HBM passes; an in-kernel NCHW
    output store was evaluated but rejected (it forces a lane->sublane
    relayout / violates the (8,128) block constraint for general tiles), so
    NCHW callers pay the (8x-smaller) output transpose in XLA.  Callers that
    keep activations in NHWC/bf16 should use transition_forward_nhwc directly.
    """
    x = jnp.transpose(x_nchw, (0, 2, 3, 1))                 # (N, H, W, C_in)
    out_nhwc = transition_forward_nhwc(x, gamma, beta, running_mean,
                                       running_var, conv_w, conv_b, eps,
                                       out_dtype=jnp.float32)
    return jnp.transpose(out_nhwc, (0, 3, 1, 2))            # (N, C_out, H/2, W/2)


if __name__ == "__main__":
    # Small shapes consistent with the module: in_ch=4, out_ch=2, 16x16 spatial.
    N, C_in, H, W = 2, 4, 16, 16
    C_out = 2

    key = jax.random.PRNGKey(0)
    k_x, k_g, k_b, k_m, k_v, k_w, k_cb = jax.random.split(key, 7)

    x = jax.random.normal(k_x, (N, C_in, H, W), dtype=jnp.float32)

    # Deterministic synthetic parameters (shapes from nn.BatchNorm2d / nn.Conv2d).
    gamma = jax.random.normal(k_g, (C_in,), dtype=jnp.float32) * 0.1 + 1.0
    beta = jax.random.normal(k_b, (C_in,), dtype=jnp.float32) * 0.1
    running_mean = jax.random.normal(k_m, (C_in,), dtype=jnp.float32) * 0.1
    running_var = jax.random.uniform(k_v, (C_in,), dtype=jnp.float32,
                                     minval=0.5, maxval=1.5)
    conv_w = jax.random.normal(k_w, (C_out, C_in, 1, 1), dtype=jnp.float32) * 0.1
    conv_b = jax.random.normal(k_cb, (C_out,), dtype=jnp.float32) * 0.1

    out = transition_forward(x, gamma, beta, running_mean, running_var,
                             conv_w, conv_b)
    out = jax.block_until_ready(out)

    # Pure-JAX f32 reference (PyTorch order: BN -> ReLU -> conv -> avgpool).
    scale = gamma / jnp.sqrt(running_var + 1e-5)
    shift = beta - running_mean * scale
    xn = jnp.transpose(x, (0, 2, 3, 1))
    y = jnp.maximum(xn * scale + shift, 0.0)
    z = jnp.einsum("nhwc,co->nhwo", y,
                   jnp.transpose(conv_w[:, :, 0, 0], (1, 0))) + conv_b
    ref = 0.25 * (z[:, 0::2, 0::2, :] + z[:, 0::2, 1::2, :]
                  + z[:, 1::2, 0::2, :] + z[:, 1::2, 1::2, :])
    ref = jnp.transpose(ref, (0, 3, 1, 2))

    assert out.shape == (N, C_out, H // 2, W // 2)
    # bf16 activations + bf16 matmul operands (f32 accumulate) -> loosened tol.
    assert jnp.allclose(out, ref, atol=2e-2, rtol=2e-2), \
        float(jnp.max(jnp.abs(out - ref)))

    print("KERNEL_OK")
</pallas_src>

<mosaic_0001>
module attributes {stable_mosaic.version = 11 : i64} {
  func.func @_transition_kernel(%arg0: i32, %arg1: i32, %arg2: memref<1x4x8x8xbf16, #tpu.memory_space<vmem>>, %arg3: memref<1x8xf32, #tpu.memory_space<vmem>>, %arg4: memref<1x8xf32, #tpu.memory_space<vmem>>, %arg5: memref<8x2xbf16, #tpu.memory_space<vmem>>, %arg6: memref<1x2xf32, #tpu.memory_space<vmem>>, %arg7: memref<1x2x8x2xf32, #tpu.memory_space<vmem>>) attributes {dimension_semantics = [#tpu.dimension_semantics<parallel>, #tpu.dimension_semantics<parallel>], iteration_bounds = array<i64: 2, 4>, scalar_prefetch = 0 : i64, scratch_operands = 0 : i64, tpu.core_type = #tpu.core_type<tc>, window_params = [{transform_indices = @transform_0, window_bounds = array<i64: 1, 4, 8, 8>}, {pipeline_mode = #tpu.pipeline_mode<synchronous>, transform_indices = @transform_1, window_bounds = array<i64: 1, 8>}, {pipeline_mode = #tpu.pipeline_mode<synchronous>, transform_indices = @transform_2, window_bounds = array<i64: 1, 8>}, {pipeline_mode = #tpu.pipeline_mode<synchronous>, transform_indices = @transform_3, window_bounds = array<i64: 8, 2>}, {pipeline_mode = #tpu.pipeline_mode<synchronous>, transform_indices = @transform_4, window_bounds = array<i64: 1, 2>}, {transform_indices = @transform_5, window_bounds = array<i64: 1, 2, 8, 2>}]} {
    %c0 = arith.constant 0 : index
    %c0_0 = arith.constant 0 : index
    %c0_1 = arith.constant 0 : index
    %c0_2 = arith.constant 0 : index
    %0 = vector.load %arg2[%c0, %c0_0, %c0_1, %c0_2] : memref<1x4x8x8xbf16, #tpu.memory_space<vmem>>, vector<1x4x8x8xbf16>
    %1 = vector.shape_cast %0 : vector<1x4x8x8xbf16> to vector<4x8x8xbf16>
    %2 = arith.extf %1 : vector<4x8x8xbf16> to vector<4x8x8xf32>
    %c0_3 = arith.constant 0 : index
    %c0_4 = arith.constant 0 : index
    %3 = vector.load %arg3[%c0_3, %c0_4] : memref<1x8xf32, #tpu.memory_space<vmem>>, vector<1x8xf32>
    %4 = vector.shape_cast %3 : vector<1x8xf32> to vector<8xf32>
    %5 = vector.shape_cast %4 : vector<8xf32> to vector<1x1x8xf32>
    %6 = vector.broadcast %5 : vector<1x1x8xf32> to vector<4x8x8xf32>
    %7 = arith.mulf %2, %6 : vector<4x8x8xf32>
    %c0_5 = arith.constant 0 : index
    %c0_6 = arith.constant 0 : index
    %8 = vector.load %arg4[%c0_5, %c0_6] : memref<1x8xf32, #tpu.memory_space<vmem>>, vector<1x8xf32>
    %9 = vector.shape_cast %8 : vector<1x8xf32> to vector<8xf32>
    %10 = vector.shape_cast %9 : vector<8xf32> to vector<1x1x8xf32>
    %11 = vector.broadcast %10 : vector<1x1x8xf32> to vector<4x8x8xf32>
    %12 = arith.addf %7, %11 : vector<4x8x8xf32>
    %cst = arith.constant 0.000000e+00 : f32
    %13 = vector.broadcast %cst : f32 to vector<4x8x8xf32>
    %14 = arith.maximumf %12, %13 : vector<4x8x8xf32>
    %15 = vector.shape_cast %14 : vector<4x8x8xf32> to vector<2x2x8x8xf32>
    %cst_7 = arith.constant dense<0.000000e+00> : vector<2x8x8xf32>
    %16 = vector.multi_reduction <add>, %15, %cst_7 [1] : vector<2x2x8x8xf32> to vector<2x8x8xf32>
    %17 = vector.shape_cast %16 : vector<2x8x8xf32> to vector<16x8xf32>
    %18 = arith.truncf %17 : vector<16x8xf32> to vector<16x8xbf16>
    %c0_8 = arith.constant 0 : index
    %c0_9 = arith.constant 0 : index
    %19 = vector.load %arg5[%c0_8, %c0_9] : memref<8x2xbf16, #tpu.memory_space<vmem>>, vector<8x2xbf16>
    %cst_10 = arith.constant dense<0.000000e+00> : vector<16x2xf32>
    %20 = tpu.matmul %18, %19, %cst_10 {dimension_numbers = #tpu.dot_dimension_numbers<[1], [0], [0], [1], [0, 0, 1, 1], [], []>} : vector<16x8xbf16>, vector<8x2xbf16>, vector<16x2xf32> -> vector<16x2xf32>
    %c0_11 = arith.constant 0 : index
    %c0_12 = arith.constant 0 : index
    %21 = vector.load %arg6[%c0_11, %c0_12] : memref<1x2xf32, #tpu.memory_space<vmem>>, vector<1x2xf32>
    %22 = vector.shape_cast %21 : vector<1x2xf32> to vector<2xf32>
    %23 = vector.shape_cast %22 : vector<2xf32> to vector<1x2xf32>
    %24 = vector.broadcast %23 : vector<1x2xf32> to vector<16x2xf32>
    %25 = arith.addf %20, %24 : vector<16x2xf32>
    %26 = vector.shape_cast %25 : vector<16x2xf32> to vector<2x8x2xf32>
    %c0_13 = arith.constant 0 : index
    %c0_14 = arith.constant 0 : index
    %c0_15 = arith.constant 0 : index
    %c0_16 = arith.constant 0 : index
    %27 = vector.load %arg7[%c0_13, %c0_14, %c0_15, %c0_16] : memref<1x2x8x2xf32, #tpu.memory_space<vmem>>, vector<1x2x8x2xf32>
    %28 = vector.shape_cast %27 : vector<1x2x8x2xf32> to vector<2x8x2xf32>
    %29 = vector.shape_cast %26 : vector<2x8x2xf32> to vector<1x2x8x2xf32>
    tpu.vector_store %arg7[%c0_13, %c0_14, %c0_15, %c0_16], %29 {strides = array<i32>} : memref<1x2x8x2xf32, #tpu.memory_space<vmem>>, vector<1x2x8x2xf32>,
    return
  }
  func.func @transform_0(%arg0: i32, %arg1: i32) -> (i32, i32, i32, i32) {
    %c0_i32 = arith.constant 0 : i32
    %c0_i32_0 = arith.constant 0 : i32
    %c0_i32_1 = arith.constant 0 : i32
    return %arg0, %arg1, %c0_i32, %c0_i32_0 : i32, i32, i32, i32
  }
  func.func @transform_1(%arg0: i32, %arg1: i32) -> (i32, i32) {
    %c0_i32 = arith.constant 0 : i32
    %c0_i32_0 = arith.constant 0 : i32
    %c0_i32_1 = arith.constant 0 : i32
    return %c0_i32, %c0_i32_0 : i32, i32
  }
  func.func @transform_2(%arg0: i32, %arg1: i32) -> (i32, i32) {
    %c0_i32 = arith.constant 0 : i32
    %c0_i32_0 = arith.constant 0 : i32
    %c0_i32_1 = arith.constant 0 : i32
    return %c0_i32, %c0_i32_0 : i32, i32
  }
  func.func @transform_3(%arg0: i32, %arg1: i32) -> (i32, i32) {
    %c0_i32 = arith.constant 0 : i32
    %c0_i32_0 = arith.constant 0 : i32
    %c0_i32_1 = arith.constant 0 : i32
    return %c0_i32, %c0_i32_0 : i32, i32
  }
  func.func @transform_4(%arg0: i32, %arg1: i32) -> (i32, i32) {
    %c0_i32 = arith.constant 0 : i32
    %c0_i32_0 = arith.constant 0 : i32
    %c0_i32_1 = arith.constant 0 : i32
    return %c0_i32, %c0_i32_0 : i32, i32
  }
  func.func @transform_5(%arg0: i32, %arg1: i32) -> (i32, i32, i32, i32) {
    %c0_i32 = arith.constant 0 : i32
    %c0_i32_0 = arith.constant 0 : i32
    %c0_i32_1 = arith.constant 0 : i32
    return %arg0, %arg1, %c0_i32, %c0_i32_0 : i32, i32, i32, i32
  }
}

</mosaic_0001>

<bundles_post_ra>
// kernel: tpu_custom_call.1
= control target key start
LH: loop header
LB: loop body
LE: loop exit
PB: predicated region body
PF: predicated region fallthrough
CT: control target
= control target key end

     0   :  { %s604_s18 = smov 0   ;;  %s606_s19 = smov 0   ;;  %s675_s0 = inlined_call_operand.vmem [shape: bf16[2,16,8,8], index: 0, kind: input, shape index: {}]   ;;  %s676_s1 = inlined_call_operand.vmem [shape: f32[1,8], index: 1, kind: input, shape index: {}]   ;;  %s677_s2 = inlined_call_operand.vmem [shape: f32[1,8], index: 2, kind: input, shape index: {}]   ;;  %s678_s3 = inlined_call_operand.vmem [shape: bf16[8,2], index: 3, kind: input, shape index: {}]   ;;  %s679_s4 = inlined_call_operand.vmem [shape: f32[1,2], index: 4, kind: input, shape index: {}]   ;;  %s680_s5 = inlined_call_operand.vmem [shape: f32[2,8,8,2], index: 5, kind: output, shape index: {}]  }
   0x1   :  { %s608_s20 = smov 0   ;;  %s610_s21 = smov 0  }
   0x2   :  { %s612_s22 = smov 0  }
   0x3 LB: > { %s24_s23 = sadd.s32 1, %s562_s20  ;;  %s27_s24 = sadd.s32 1, %s566_s21  ;;  %s570_s22 = sphi %s612_s22, %s15_s22   ;;  %s566_s21 = sphi %s610_s21, %s684_s21   ;;  %s562_s20 = sphi %s608_s20, %s683_s20   ;;  %s558_s19 = sphi %s606_s19, %s682_s19   ;;  %s554_s18 = sphi %s604_s18, %s681_s18  }
   0x4   : > { %p25_p0 = scmp.ge.s32.totalorder %s24_s23, 4  ;;  %p460_p1 = scmp.ge.s32.totalorder %s570_s22, 1 }
   0x5   : > { %p208_p2 = scmp.lt.s32.totalorder %s570_s22, 9 }
   0x6   : > { %s686_s23 = smov (%p25_p0, %s24_s23), 0  ;;  %s688_s24 = smov (!%p25_p0, %s27_s24), %s566_s21 }
   0x7   : > { %p209_p3 = pnand %p460_p1, %p208_p2  ;;  %p29_p4 = scmp.ge.s32.totalorder %s688_s24, 2 }
   0x8   : > { %v307_v0 = vld [vmem:[%s678_s3] sm:$0xf] (!%p209_p3)  ;;  %vm318_vm0 = vcmask (!%p209_p3), 1043456   ;;  %s461_s27 = sshll.u32 (!%p209_p3), %s554_s18, 2  ;;  %v572_v1 = vmov (!%p209_p3), 0.0   ;;  %vm573_vm1 = vmmov (!%p209_p3), 0  }
   0x9   : > { %s690_s24 = smov (%p29_p4, %s688_s24), 0  ;;  %212 = sbr.rel (%p209_p3) target bundleno = 252 (0xfc), region = 40 }
   0xa   : > { %484 = vmatprep.subr.bf16.mxu0 (!%p209_p3), %v572_v1  ;;  %v320_v2 = vsel (!%p209_p3), %vm318_vm0, %v307_v0, 0  ;;  %486 = vmatprep.mubr.msk.bf16.mxu0 (!%p209_p3), %vm573_vm1, %v572_v1  ;;  %p245_p5 = scmp.lt.s32.totalorder (!%p209_p3), %s558_s19, 1  ;;  %p247_p6 = scmp.lt.s32.totalorder (!%p209_p3), %s461_s27, 15  ;;  %v467_v5 = vld [vmem:[%s676_s1] ss:$0 sm:$0xff] (!%p209_p3)  ;;  %vm299_vm2 = vcmask (!%p209_p3), 64512  }
   0xb   : > { %485 = vmatpush3.bf16.msra.mxu0 (!%p209_p3), %v320_v2  ;;  %v468_v10 = vld [vmem:[%s677_s2] ss:$0 sm:$0xff] (!%p209_p3)  ;;  %s464_s13 = sshll.u32 (!%p209_p3), %s554_s18, 1  ;;  %vm363_vm3 = vcmask (!%p209_p3), 15360  }
   0xc   : > { %p257_p7 = scmp.lt.s32.totalorder (!%p209_p3), %s464_s13, 7  ;;  %v469_v30 = vld [vmem:[%s679_s4] ss:$0 sm:$0xff] (!%p209_p3) }
  0x10   : > { %s692_s19 = smov (!%p245_p5, %s558_s19), 1  ;;  %s694_s27 = smov (!%p247_p6, %s461_s27), 15 }
  0x11   : > { %s462_s28 = sshll.u32 %s692_s19, 4  ;;  %s696_s13 = smov (!%p257_p7, %s464_s13), 7 }
  0x12   : > { %s250_s29 = sadd.s32 %s462_s28, %s694_s27  ;;  %s465_s14 = sshll.u32 %s692_s19, 3 }
  0x13   : > { %s463_s30 = sshll.u32 %s250_s29, 2  ;;  %s260_s15 = sadd.s32 %s465_s14, %s696_s13 }
  0x14   : > { %s252_s8 = scalar_lea.vmem %s675_s0, %s463_s30  ;;  %s466_s16 = sshll.u32 %s260_s15, 3 }
  0x15   : > { %v474_v3 = vld [vmem:[%s252_s8] sm:$0xff]   ;;  %v481_v4 = vld [vmem:[%s252_s8 + $0x8] sm:$0xff]   ;;  %s262_s28 = scalar_lea.vmem %s680_s5, %s466_s16 }
  0x16   : > { %v475_v6 = vunpack.c.l.bf16 %v474_v3  ;;  %v476_v7 = vunpack.c.h.bf16 %v474_v3  ;;  %v479_v8 = vunpack.c.l.bf16 %v481_v4  ;;  %v480_v9 = vunpack.c.h.bf16 %v481_v4 }
  0x18   : > { %v280_v11 = vmul.f32 %v475_v6, %v467_v5  ;;  %v281_v12 = vmul.f32 %v476_v7, %v467_v5  ;;  %v282_v13 = vmul.f32 %v479_v8, %v467_v5  ;;  %v283_v14 = vmul.f32 %v480_v9, %v467_v5 }
  0x1a   : > { %v291_v15 = vadd.f32 %v468_v10, %v280_v11  ;;  %v292_v16 = vadd.f32 %v468_v10, %v281_v12  ;;  %v293_v17 = vadd.f32 %v468_v10, %v282_v13  ;;  %v294_v18 = vadd.f32 %v468_v10, %v283_v14 }
  0x1c   : > { %v295_v19 = vmax.f32 %v291_v15, 0.0  ;;  %v296_v20 = vmax.f32 %v292_v16, 0.0  ;;  %v297_v21 = vmax.f32 %v293_v17, 0.0  ;;  %v298_v22 = vmax.f32 %v294_v18, 0.0 }
  0x1e   : > { %v300_v23 = vsel %vm299_vm2, %v295_v19, 0.0  ;;  %v301_v24 = vsel %vm299_vm2, %v296_v20, 0.0  ;;  %v303_v25 = vsel %vm299_vm2, %v297_v21, 0.0  ;;  %v304_v26 = vsel %vm299_vm2, %v298_v22, 0.0 }
  0x1f   : > { %v302_v27 = vadd.f32 %v301_v24, %v300_v23  ;;  %v305_v28 = vadd.f32 %v304_v26, %v303_v25 }
  0x21   : > { %v306_v29 = vpack.c.bf16 %v305_v28, %v302_v27 }
  0x23   : > { %487 = vmatmul.mubr.msk.bf16.vlgmr.msra.gmra.mrb[0].mxu0 %vm299_vm2, %v306_v29 }
  0xf6   : > { %v356_v31 = vpop.f32.mrb[0].mxu0 }
  0xf7   : > { %v357_v32 = vadd.f32 %v469_v30, %v356_v31  ;;  %v488_v33 = vpop.f32.mrb[1].mxu0 }
  0xf8   : > { %v359_v34 = vpop.f32.mrb[2].mxu0 }
  0xf9   : > { %364 = vst.msk [vmem:[%s262_s28] sm:$0xff] %vm363_vm3, %v357_v32  ;;  %v360_v35 = vadd.f32 %v469_v30, %v359_v34  ;;  %v489_v36 = vpop.f32.mrb[3].mxu0 }
  0xfb   : > { %365 = vst.msk [vmem:[%s262_s28 + $0x8] sm:$0xff] %vm363_vm3, %v360_v35 }
  0xfc PF: > { %s15_s22 = sadd.s32 1, %s570_s22   ;;  %s681_s18 = smov %s562_s20 }
  0xfd   : > { %p12_p8 = scmp.ge.s32.totalorder %s15_s22, 10   ;;  %s682_s19 = smov %s566_s21 }
  0xfe   : > { %s683_s20 = smov %s686_s23  ;;  %s684_s21 = smov %s690_s24 }
  0xff   :  { %14 = sbr.rel (!%p12_p8) target bundleno = 3 (0x3), region = 70 }

</bundles_post_ra>
